<compile_context>
chip_gen: v6e
topology: v6e:2x2x1
jax: 0.10.0
libtpu: 0.0.40
codegen_flags: <defaults>
</compile_context>

<pallas_src>
import jax
import jax.numpy as jnp
from jax.experimental import pallas as pl
from jax.experimental.pallas import tpu as pltpu

HIDDEN1 = 410
HIDDEN2 = 410
HIDDEN3 = 200

LANE = 128
SUBLANE = 8


def _round_up(x, m):
    return (x + m - 1) // m * m


def _mlp_kernel(x_ref, w1_ref, b1_ref, w2_ref, b2_ref, w3_ref, b3_ref,
                w4_ref, b4_ref, o_ref):
    # Fused 4-layer MLP for one batch tile. All matmuls run on the MXU with
    # bf16 operands and f32 accumulation; bias + ReLU are f32 VPU ops.
    x = x_ref[...]                                # already bf16 (cast in wrapper)

    h = jnp.dot(x, w1_ref[...], preferred_element_type=jnp.float32) + b1_ref[...]
    h = jnp.maximum(h, 0.0)                       # relu_in

    h = jnp.dot(h.astype(jnp.bfloat16), w2_ref[...],
                preferred_element_type=jnp.float32) + b2_ref[...]
    # drop (eval mode -> identity)
    h = jnp.maximum(h, 0.0)                       # relu_hidden1

    h = jnp.dot(h.astype(jnp.bfloat16), w3_ref[...],
                preferred_element_type=jnp.float32) + b3_ref[...]
    # drop2 (eval mode -> identity)
    h = jnp.maximum(h, 0.0)                       # relu_hidden2

    out = jnp.dot(h.astype(jnp.bfloat16), w4_ref[...],
                  preferred_element_type=jnp.float32) + b4_ref[...]
    o_ref[...] = out.astype(o_ref.dtype)


def _choose_tiling(batch, max_tile_m):
    """Pick (tile_m, grid_m): balanced tiles, >=2 grid steps for batch>=64
    (so v7x's two TensorCores both get work), capped at max_tile_m."""
    max_tile_m = _round_up(max(max_tile_m, SUBLANE), SUBLANE)
    batch8 = _round_up(batch, SUBLANE)
    if batch8 <= max_tile_m:
        grid_m = 2 if batch8 >= 64 else 1
    else:
        grid_m = pl.cdiv(batch8, max_tile_m)
    tile_m = _round_up(pl.cdiv(batch, grid_m), SUBLANE)
    return tile_m, grid_m


def red_arquitectura_b(x, params, *, max_tile_m=512):
    """Run the fused MLP kernel. x: (batch, input_size) float32."""
    (w1, b1), (w2, b2), (w3, b3), (w4, b4) = params
    batch, input_size = x.shape
    output_size = w4.shape[1]

    # Lane-padded feature dims (multiples of 128) -> clean (8,128) tiles,
    # lane-dense output stores, no remainder handling inside the kernel.
    in_p = _round_up(input_size, LANE)
    h1_p = _round_up(HIDDEN1, LANE)      # 512
    h2_p = _round_up(HIDDEN2, LANE)      # 512
    h3_p = _round_up(HIDDEN3, LANE)      # 256
    out_p = _round_up(output_size, LANE)

    def pad2(a, rows, cols):
        return jnp.pad(a, ((0, rows - a.shape[0]), (0, cols - a.shape[1])))

    # Zero-padded weights as bf16 MXU operands; biases stay f32.
    w1p = pad2(w1, in_p, h1_p).astype(jnp.bfloat16)
    w2p = pad2(w2, h1_p, h2_p).astype(jnp.bfloat16)
    w3p = pad2(w3, h2_p, h3_p).astype(jnp.bfloat16)
    w4p = pad2(w4, h3_p, out_p).astype(jnp.bfloat16)
    b1p = pad2(b1, 1, h1_p).astype(jnp.float32)
    b2p = pad2(b2, 1, h2_p).astype(jnp.float32)
    b3p = pad2(b3, 1, h3_p).astype(jnp.float32)
    b4p = pad2(b4, 1, out_p).astype(jnp.float32)

    # Balanced batch tiling (>=2 tiles once batch>=64 for v7x megacore).
    tile_m, grid_m = _choose_tiling(batch, max_tile_m)
    batch_p = grid_m * tile_m
    # Pad + cast to bf16 here: halves x's HBM->VMEM DMA and its double buffer.
    xp = pad2(x, batch_p, in_p).astype(jnp.bfloat16)

    # Grid-invariant operands: single VMEM buffer (no useless double-buffer).
    resident = lambda a: pl.BlockSpec(a.shape, lambda i: (0, 0),
                                      pipeline_mode=pl.Buffered(1))

    grid_spec = pltpu.PrefetchScalarGridSpec(
        num_scalar_prefetch=0,
        grid=(grid_m,),
        in_specs=[
            pl.BlockSpec((tile_m, in_p), lambda i: (i, 0)),  # x tile
            resident(w1p), resident(b1p),
            resident(w2p), resident(b2p),
            resident(w3p), resident(b3p),
            resident(w4p), resident(b4p),
        ],
        out_specs=pl.BlockSpec((tile_m, out_p), lambda i: (i, 0)),
    )

    flops = 2 * batch_p * (in_p * h1_p + h1_p * h2_p + h2_p * h3_p + h3_p * out_p)
    bytes_accessed = (
        xp.size * 2 + batch_p * out_p * 4
        + (w1p.size + w2p.size + w3p.size + w4p.size) * 2
        + (b1p.size + b2p.size + b3p.size + b4p.size) * 4
    )

    out_padded = pl.pallas_call(
        _mlp_kernel,
        out_shape=jax.ShapeDtypeStruct((batch_p, out_p), jnp.float32),
        grid_spec=grid_spec,
        compiler_params=pltpu.CompilerParams(
            dimension_semantics=("parallel",),
            vmem_limit_bytes=32 * 1024 * 1024,      # lift v5e's 16 MiB default
            allow_input_fusion=[True] * 9,          # fuse wrapper pad/cast into the call
        ),
        cost_estimate=pl.CostEstimate(
            flops=flops, transcendentals=0, bytes_accessed=bytes_accessed),
    )(xp, w1p, b1p, w2p, b2p, w3p, b3p, w4p, b4p)

    # Slice away the (small, balanced) batch pad and the lane pad.
    return out_padded[:batch, :output_size]


def init_linear(key, fan_in, fan_out):
    """PyTorch nn.Linear default init: U(-1/sqrt(fan_in), 1/sqrt(fan_in))."""
    kw, kb = jax.random.split(key)
    bound = 1.0 / jnp.sqrt(jnp.float32(fan_in))
    # Stored as (in, out) so the kernel does x @ W.
    w = jax.random.uniform(kw, (fan_in, fan_out), jnp.float32, -bound, bound)
    b = jax.random.uniform(kb, (1, fan_out), jnp.float32, -bound, bound)
    return w, b


def init_params(key, input_size, output_size):
    k1, k2, k3, k4 = jax.random.split(key, 4)
    return (
        init_linear(k1, input_size, HIDDEN1),
        init_linear(k2, HIDDEN1, HIDDEN2),
        init_linear(k3, HIDDEN2, HIDDEN3),
        init_linear(k4, HIDDEN3, output_size),
    )


def reference_forward(x, params, *, matmul_dtype=jnp.float32):
    """Pure-JAX reference. With matmul_dtype=bf16 it mirrors the kernel's
    bf16-operand / f32-accumulate matmuls for tight correctness checks."""
    (w1, b1), (w2, b2), (w3, b3), (w4, b4) = params

    def dense(h, w, b):
        return jnp.dot(h.astype(matmul_dtype), w.astype(matmul_dtype),
                       preferred_element_type=jnp.float32) + b

    h = jnp.maximum(dense(x, w1, b1), 0.0)
    h = jnp.maximum(dense(h, w2, b2), 0.0)
    h = jnp.maximum(dense(h, w3, b3), 0.0)
    return dense(h, w4, b4)


if __name__ == "__main__":
    key = jax.random.PRNGKey(0)
    k_params, k_x = jax.random.split(key)

    batch = 16
    input_size = 32
    output_size = 10

    params = init_params(k_params, input_size, output_size)
    x = jax.random.normal(k_x, (batch, input_size), jnp.float32)

    out = red_arquitectura_b(x, params)
    out = jax.block_until_ready(out)
    assert out.shape == (batch, output_size)

    # Tight check against a bf16-operand / f32-accumulate reference.
    ref_bf16 = reference_forward(x, params, matmul_dtype=jnp.bfloat16)
    assert jnp.allclose(out, ref_bf16, atol=5e-3, rtol=5e-3), \
        "mismatch vs bf16-matched reference"

    # Loose check against the pure-f32 reference (bf16 operand rounding).
    ref_f32 = reference_forward(x, params, matmul_dtype=jnp.float32)
    assert jnp.allclose(out, ref_f32, atol=5e-2, rtol=5e-2), \
        "mismatch vs f32 reference"

    # Exercise the multi-tile / dual-TensorCore path (grid_m >= 2, balanced tiles).
    batch2 = 300
    x2 = jax.random.normal(jax.random.PRNGKey(1), (batch2, input_size), jnp.float32)
    out2 = jax.block_until_ready(red_arquitectura_b(x2, params))
    ref2 = reference_forward(x2, params, matmul_dtype=jnp.bfloat16)
    assert out2.shape == (batch2, output_size)
    assert jnp.allclose(out2, ref2, atol=5e-3, rtol=5e-3), \
        "mismatch vs bf16-matched reference (multi-tile)"

    print("KERNEL_OK")
</pallas_src>

<mosaic_0001>
module attributes {stable_mosaic.version = 11 : i64} {
  func.func @_mlp_kernel(%arg0: i32, %arg1: memref<16x128xbf16, #tpu.memory_space<vmem>>, %arg2: memref<128x512xbf16, #tpu.memory_space<vmem>>, %arg3: memref<1x512xf32, #tpu.memory_space<vmem>>, %arg4: memref<512x512xbf16, #tpu.memory_space<vmem>>, %arg5: memref<1x512xf32, #tpu.memory_space<vmem>>, %arg6: memref<512x256xbf16, #tpu.memory_space<vmem>>, %arg7: memref<1x256xf32, #tpu.memory_space<vmem>>, %arg8: memref<256x128xbf16, #tpu.memory_space<vmem>>, %arg9: memref<1x128xf32, #tpu.memory_space<vmem>>, %arg10: memref<16x128xf32, #tpu.memory_space<vmem>>) attributes {dimension_semantics = [#tpu.dimension_semantics<parallel>], iteration_bounds = array<i64: 1>, scalar_prefetch = 0 : i64, scratch_operands = 0 : i64, tpu.core_type = #tpu.core_type<tc>, window_params = [{transform_indices = @transform_0, window_bounds = array<i64: 16, 128>}, {pipeline_mode = #tpu.pipeline_mode<synchronous>, transform_indices = @transform_1, window_bounds = array<i64: 128, 512>}, {pipeline_mode = #tpu.pipeline_mode<synchronous>, transform_indices = @transform_2, window_bounds = array<i64: 1, 512>}, {pipeline_mode = #tpu.pipeline_mode<synchronous>, transform_indices = @transform_3, window_bounds = array<i64: 512, 512>}, {pipeline_mode = #tpu.pipeline_mode<synchronous>, transform_indices = @transform_4, window_bounds = array<i64: 1, 512>}, {pipeline_mode = #tpu.pipeline_mode<synchronous>, transform_indices = @transform_5, window_bounds = array<i64: 512, 256>}, {pipeline_mode = #tpu.pipeline_mode<synchronous>, transform_indices = @transform_6, window_bounds = array<i64: 1, 256>}, {pipeline_mode = #tpu.pipeline_mode<synchronous>, transform_indices = @transform_7, window_bounds = array<i64: 256, 128>}, {pipeline_mode = #tpu.pipeline_mode<synchronous>, transform_indices = @transform_8, window_bounds = array<i64: 1, 128>}, {transform_indices = @transform_9, window_bounds = array<i64: 16, 128>}]} {
    %c0 = arith.constant 0 : index
    %c0_0 = arith.constant 0 : index
    %0 = vector.load %arg1[%c0, %c0_0] : memref<16x128xbf16, #tpu.memory_space<vmem>>, vector<16x128xbf16>
    %c0_1 = arith.constant 0 : index
    %c0_2 = arith.constant 0 : index
    %1 = vector.load %arg2[%c0_1, %c0_2] : memref<128x512xbf16, #tpu.memory_space<vmem>>, vector<128x512xbf16>
    %cst = arith.constant dense<0.000000e+00> : vector<16x512xf32>
    %2 = tpu.matmul %0, %1, %cst {dimension_numbers = #tpu.dot_dimension_numbers<[1], [0], [0], [1], [0, 0, 1, 1], [], []>} : vector<16x128xbf16>, vector<128x512xbf16>, vector<16x512xf32> -> vector<16x512xf32>
    %c0_3 = arith.constant 0 : index
    %c0_4 = arith.constant 0 : index
    %3 = vector.load %arg3[%c0_3, %c0_4] : memref<1x512xf32, #tpu.memory_space<vmem>>, vector<1x512xf32>
    %4 = vector.broadcast %3 : vector<1x512xf32> to vector<16x512xf32>
    %5 = arith.addf %2, %4 : vector<16x512xf32>
    %cst_5 = arith.constant 0.000000e+00 : f32
    %6 = vector.broadcast %cst_5 : f32 to vector<16x512xf32>
    %7 = arith.maximumf %5, %6 : vector<16x512xf32>
    %8 = arith.truncf %7 : vector<16x512xf32> to vector<16x512xbf16>
    %c0_6 = arith.constant 0 : index
    %c0_7 = arith.constant 0 : index
    %9 = vector.load %arg4[%c0_6, %c0_7] : memref<512x512xbf16, #tpu.memory_space<vmem>>, vector<512x512xbf16>
    %cst_8 = arith.constant dense<0.000000e+00> : vector<16x512xf32>
    %10 = tpu.matmul %8, %9, %cst_8 {dimension_numbers = #tpu.dot_dimension_numbers<[1], [0], [0], [1], [0, 0, 1, 1], [], []>} : vector<16x512xbf16>, vector<512x512xbf16>, vector<16x512xf32> -> vector<16x512xf32>
    %c0_9 = arith.constant 0 : index
    %c0_10 = arith.constant 0 : index
    %11 = vector.load %arg5[%c0_9, %c0_10] : memref<1x512xf32, #tpu.memory_space<vmem>>, vector<1x512xf32>
    %12 = vector.broadcast %11 : vector<1x512xf32> to vector<16x512xf32>
    %13 = arith.addf %10, %12 : vector<16x512xf32>
    %cst_11 = arith.constant 0.000000e+00 : f32
    %14 = vector.broadcast %cst_11 : f32 to vector<16x512xf32>
    %15 = arith.maximumf %13, %14 : vector<16x512xf32>
    %16 = arith.truncf %15 : vector<16x512xf32> to vector<16x512xbf16>
    %c0_12 = arith.constant 0 : index
    %c0_13 = arith.constant 0 : index
    %17 = vector.load %arg6[%c0_12, %c0_13] : memref<512x256xbf16, #tpu.memory_space<vmem>>, vector<512x256xbf16>
    %cst_14 = arith.constant dense<0.000000e+00> : vector<16x256xf32>
    %18 = tpu.matmul %16, %17, %cst_14 {dimension_numbers = #tpu.dot_dimension_numbers<[1], [0], [0], [1], [0, 0, 1, 1], [], []>} : vector<16x512xbf16>, vector<512x256xbf16>, vector<16x256xf32> -> vector<16x256xf32>
    %c0_15 = arith.constant 0 : index
    %c0_16 = arith.constant 0 : index
    %19 = vector.load %arg7[%c0_15, %c0_16] : memref<1x256xf32, #tpu.memory_space<vmem>>, vector<1x256xf32>
    %20 = vector.broadcast %19 : vector<1x256xf32> to vector<16x256xf32>
    %21 = arith.addf %18, %20 : vector<16x256xf32>
    %cst_17 = arith.constant 0.000000e+00 : f32
    %22 = vector.broadcast %cst_17 : f32 to vector<16x256xf32>
    %23 = arith.maximumf %21, %22 : vector<16x256xf32>
    %24 = arith.truncf %23 : vector<16x256xf32> to vector<16x256xbf16>
    %c0_18 = arith.constant 0 : index
    %c0_19 = arith.constant 0 : index
    %25 = vector.load %arg8[%c0_18, %c0_19] : memref<256x128xbf16, #tpu.memory_space<vmem>>, vector<256x128xbf16>
    %cst_20 = arith.constant dense<0.000000e+00> : vector<16x128xf32>
    %26 = tpu.matmul %24, %25, %cst_20 {dimension_numbers = #tpu.dot_dimension_numbers<[1], [0], [0], [1], [0, 0, 1, 1], [], []>} : vector<16x256xbf16>, vector<256x128xbf16>, vector<16x128xf32> -> vector<16x128xf32>
    %c0_21 = arith.constant 0 : index
    %c0_22 = arith.constant 0 : index
    %27 = vector.load %arg9[%c0_21, %c0_22] : memref<1x128xf32, #tpu.memory_space<vmem>>, vector<1x128xf32>
    %28 = vector.broadcast %27 : vector<1x128xf32> to vector<16x128xf32>
    %29 = arith.addf %26, %28 : vector<16x128xf32>
    %c0_23 = arith.constant 0 : index
    %c0_24 = arith.constant 0 : index
    %30 = vector.load %arg10[%c0_23, %c0_24] : memref<16x128xf32, #tpu.memory_space<vmem>>, vector<16x128xf32>
    tpu.vector_store %arg10[%c0_23, %c0_24], %29 {strides = array<i32>} : memref<16x128xf32, #tpu.memory_space<vmem>>, vector<16x128xf32>,
    return
  }
  func.func @transform_0(%arg0: i32) -> (i32, i32) {
    %c0_i32 = arith.constant 0 : i32
    %c0_i32_0 = arith.constant 0 : i32
    return %arg0, %c0_i32 : i32, i32
  }
  func.func @transform_1(%arg0: i32) -> (i32, i32) {
    %c0_i32 = arith.constant 0 : i32
    %c0_i32_0 = arith.constant 0 : i32
    %c0_i32_1 = arith.constant 0 : i32
    return %c0_i32, %c0_i32_0 : i32, i32
  }
  func.func @transform_2(%arg0: i32) -> (i32, i32) {
    %c0_i32 = arith.constant 0 : i32
    %c0_i32_0 = arith.constant 0 : i32
    %c0_i32_1 = arith.constant 0 : i32
    return %c0_i32, %c0_i32_0 : i32, i32
  }
  func.func @transform_3(%arg0: i32) -> (i32, i32) {
    %c0_i32 = arith.constant 0 : i32
    %c0_i32_0 = arith.constant 0 : i32
    %c0_i32_1 = arith.constant 0 : i32
    return %c0_i32, %c0_i32_0 : i32, i32
  }
  func.func @transform_4(%arg0: i32) -> (i32, i32) {
    %c0_i32 = arith.constant 0 : i32
    %c0_i32_0 = arith.constant 0 : i32
    %c0_i32_1 = arith.constant 0 : i32
    return %c0_i32, %c0_i32_0 : i32, i32
  }
  func.func @transform_5(%arg0: i32) -> (i32, i32) {
    %c0_i32 = arith.constant 0 : i32
    %c0_i32_0 = arith.constant 0 : i32
    %c0_i32_1 = arith.constant 0 : i32
    return %c0_i32, %c0_i32_0 : i32, i32
  }
  func.func @transform_6(%arg0: i32) -> (i32, i32) {
    %c0_i32 = arith.constant 0 : i32
    %c0_i32_0 = arith.constant 0 : i32
    %c0_i32_1 = arith.constant 0 : i32
    return %c0_i32, %c0_i32_0 : i32, i32
  }
  func.func @transform_7(%arg0: i32) -> (i32, i32) {
    %c0_i32 = arith.constant 0 : i32
    %c0_i32_0 = arith.constant 0 : i32
    %c0_i32_1 = arith.constant 0 : i32
    return %c0_i32, %c0_i32_0 : i32, i32
  }
  func.func @transform_8(%arg0: i32) -> (i32, i32) {
    %c0_i32 = arith.constant 0 : i32
    %c0_i32_0 = arith.constant 0 : i32
    %c0_i32_1 = arith.constant 0 : i32
    return %c0_i32, %c0_i32_0 : i32, i32
  }
  func.func @transform_9(%arg0: i32) -> (i32, i32) {
    %c0_i32 = arith.constant 0 : i32
    %c0_i32_0 = arith.constant 0 : i32
    return %arg0, %c0_i32 : i32, i32
  }
}

</mosaic_0001>

<bundles_post_ra>
// kernel: tpu_custom_call.1
= control target key start
LH: loop header
LB: loop body
LE: loop exit
PB: predicated region body
PF: predicated region fallthrough
CT: control target
= control target key end

     0   :  { %14 = vsyncpa [#allocation3], 0  ;;  %s3013_s0 = inlined_call_operand.hbm [shape: bf16[16,128], index: 0, kind: input, shape index: {}]   ;;  %s3014_s1 = inlined_call_operand.hbm [shape: bf16[128,512], index: 1, kind: input, shape index: {}]   ;;  %s3015_s2 = inlined_call_operand.hbm [shape: f32[1,512], index: 2, kind: input, shape index: {}]   ;;  %s3016_s3 = inlined_call_operand.hbm [shape: bf16[512,512], index: 3, kind: input, shape index: {}]   ;;  %s3017_s4 = inlined_call_operand.vmem [shape: f32[1,512], index: 4, kind: input, shape index: {}]   ;;  %s3018_s5 = inlined_call_operand.hbm [shape: bf16[512,256], index: 5, kind: input, shape index: {}]   ;;  %s3019_s6 = inlined_call_operand.vmem [shape: f32[1,256], index: 6, kind: input, shape index: {}]   ;;  %s3020_s7 = inlined_call_operand.hbm [shape: bf16[256,128], index: 7, kind: input, shape index: {}]   ;;  %s3021_s8 = inlined_call_operand.vmem [shape: f32[1,128], index: 8, kind: input, shape index: {}]   ;;  %s3022_s9 = inlined_call_operand.hbm [shape: f32[16,128], index: 9, kind: output, shape index: {}]  }
   0x1   :  { %15 = vsyncpa [#allocation6], 0 }
   0x2   :  { %16 = vsyncpa [#allocation9], 0 }
   0x3   :  { %17 = vsyncpa [#allocation12], 0 }
   0x4   :  { %18 = vsyncpa [#allocation4], 0  ;;  %s2875_s30 = smov [#allocation5]  }
   0x5   :  { %s36_s10 = sshll.u32 %s2875_s30, 4  ;;  %s37_s10 = int_to_ptr.vmem [resolvable:$true] %s36_s10 }
   0x6   :  { %s2733_s11 = scalar_lea.vmem %s37_s10, 4096  ;;  %p2738_p1 = scmp.lt.s32.totalorder %s37_s10, %s37_s10 }
   0x7   :  { %p2734_p0 = scmp.ne.s32.totalorder %s37_s10, %s2733_s11  ;;  %p2739_p2 = scmp.lt.s32.totalorder %s2733_s11, %s2733_s11 }
   0x9   :  { %p2740_p3 = por %p2739_p2, %p2738_p1 }
   0xb   :  { %p2741_p4 = pnand %p2740_p3, %p2734_p0 }
   0xd   :  { %2744 = shalt.err (!%p2741_p4)
}
   0xe   :  { %s2876_s12 = smov 256   ;;  %s2877_s13 = smov 16  }
   0xf   :  { %42 = dma.hbm_to_vmem [thread:$0]  %s3014_s1, 4096, %s37_s10, [#allocation6], %s2876_s12, %s2876_s12, %s2877_s13  }
  0x10   :  { %s2878_s16 = smov [#allocation8]   ;;  %s2879_s18 = smov [#allocation2]  }
  0x11   :  { %s58_s17 = sshll.u32 %s2878_s16, 4  ;;  %s24_s19 = sshll.u32 %s2879_s18, 4  ;;  %s59_s17 = int_to_ptr.vmem [resolvable:$true] %s58_s17  ;;  %s25_s19 = int_to_ptr.vmem [resolvable:$true] %s24_s19 }
  0x12   :  { %s2753_s20 = scalar_lea.vmem %s59_s17, 16384  ;;  %p2758_p6 = scmp.lt.s32.totalorder %s59_s17, %s59_s17 }
  0x13   :  { %p2754_p5 = scmp.ne.s32.totalorder %s59_s17, %s2753_s20  ;;  %p2759_p7 = scmp.lt.s32.totalorder %s2753_s20, %s2753_s20 }
  0x15   :  { %p2760_p8 = por %p2759_p7, %p2758_p6 }
  0x17   :  { %p2761_p9 = pnand %p2760_p8, %p2754_p5 }
  0x19   :  { %2764 = shalt.err (!%p2761_p9)
}
  0x1a   :  { %64 = dma.hbm_to_vmem [thread:$0]  %s3016_s3, 16384, %s59_s17, [#allocation9], %s2876_s12, %s2876_s12, %s2877_s13  }
  0x1b   :  { %s2773_s23 = scalar_lea.vmem %s25_s19, 128  ;;  %p2778_p11 = scmp.lt.s32.totalorder %s25_s19, %s25_s19 }
  0x1c   :  { %p2774_p10 = scmp.ne.s32.totalorder %s25_s19, %s2773_s23  ;;  %p2779_p12 = scmp.lt.s32.totalorder %s2773_s23, %s2773_s23 }
  0x1e   :  { %p2780_p13 = por %p2779_p12, %p2778_p11 }
  0x20   :  { %p2781_p0 = pnand %p2780_p13, %p2774_p10 }
  0x22   :  { %2784 = shalt.err (!%p2781_p0)
}
  0x23   :  { %s2880_s1 = smov 64   ;;  %s2881_s24 = smov 4  }
  0x24   :  { %30 = dma.hbm_to_vmem [thread:$0]  %s3013_s0, 128, %s25_s19, [#allocation3], %s2880_s1, %s2880_s1, %s2881_s24  }
  0x25   :  { %s2882_s27 = smov [#allocation7]   ;;  %s2883_s3 = smov [#allocation10]  }
  0x26   :  { %s49_s28 = sshll.u32 %s2882_s27, 4  ;;  %s72_s29 = sshll.u32 %s2883_s3, 4  ;;  %s50_s28 = int_to_ptr.vmem [resolvable:$true] %s49_s28  ;;  %s73_s29 = int_to_ptr.vmem [resolvable:$true] %s72_s29 }
  0x27   :  { %s2793_s30 = scalar_lea.vmem %s50_s28, 64  ;;  %p2798_p2 = scmp.lt.s32.totalorder %s50_s28, %s50_s28 }
  0x28   :  { %p2794_p1 = scmp.ne.s32.totalorder %s50_s28, %s2793_s30  ;;  %p2799_p3 = scmp.lt.s32.totalorder %s2793_s30, %s2793_s30 }
  0x2a   :  { %p2800_p4 = por %p2799_p3, %p2798_p2 }
  0x2c   :  { %p2801_p5 = pnand %p2800_p4, %p2794_p1 }
  0x2e   :  { %2804 = shalt.err (!%p2801_p5)
}
  0x2f   :  { %52 = dma.hbm_to_vmem [thread:$0]  %s3015_s2, 64, %s50_s28, [#allocation6]  }
  0x30   :  { %s2813_s12 = scalar_lea.vmem %s73_s29, 8192  ;;  %p2818_p7 = scmp.lt.s32.totalorder %s73_s29, %s73_s29 }
  0x31   :  { %p2814_p6 = scmp.ne.s32.totalorder %s73_s29, %s2813_s12  ;;  %p2819_p8 = scmp.lt.s32.totalorder %s2813_s12, %s2813_s12 }
  0x33   :  { %p2820_p9 = por %p2819_p8, %p2818_p7 }
  0x35   :  { %p2821_p10 = pnand %p2820_p9, %p2814_p6 }
  0x37   :  { %2824 = shalt.err (!%p2821_p10)
}
  0x38   :  { %s2884_s0 = smov 128   ;;  %s2885_s13 = smov 8  }
  0x39   :  { %78 = dma.hbm_to_vmem [thread:$0]  %s3018_s5, 8192, %s73_s29, [#allocation9], %s2884_s0, %s2884_s0, %s2885_s13  }
  0x3a   :  { %s2886_s16 = smov [#allocation11]  }
  0x3b   :  { %s86_s17 = sshll.u32 %s2886_s16, 4  ;;  %s87_s17 = int_to_ptr.vmem [resolvable:$true] %s86_s17 }
  0x3c   :  { %s2833_s2 = scalar_lea.vmem %s87_s17, 2048  ;;  %p2838_p12 = scmp.lt.s32.totalorder %s87_s17, %s87_s17 }
  0x3d   :  { %p2834_p11 = scmp.ne.s32.totalorder %s87_s17, %s2833_s2  ;;  %p2839_p13 = scmp.lt.s32.totalorder %s2833_s2, %s2833_s2 }
  0x3f   :  { %p2840_p0 = por %p2839_p13, %p2838_p12 }
  0x41   :  { %p2841_p1 = pnand %p2840_p0, %p2834_p11 }
  0x43   :  { %2844 = shalt.err (!%p2841_p1)
}
  0x44   :  { %92 = dma.hbm_to_vmem [thread:$0]  %s3020_s7, 2048, %s87_s17, [#allocation12], %s2880_s1, %s2880_s1, %s2881_s24  }
  0x45   :  { %2865 = dma.done.wait [#allocation3], 128  }
  0x46   :  { %2866 = vsyncadd [#allocation3], 4294967168 }
  0x47   :  { %2867 = dma.done.wait [#allocation6], 4160  }
  0x48   :  { %2868 = vsyncadd [#allocation6], 4294963136 }
  0x49   :  { %2869 = dma.done.wait [#allocation9], 24576  }
  0x4a   :  { %2870 = vsyncadd [#allocation9], 4294942720 }
  0x4b   :  { %2871 = dma.done.wait [#allocation12], 2048  }
  0x4c   :  { %2872 = vsyncadd [#allocation12], 4294965248  ;;  %v2887_v0 = vmov 0   ;;  %v2372_v1 = vld [vmem:[#allocation5 + $0xe4] ss:$16 sps:$4 sm:$0xff]   ;;  %v2420_v35 = vld [vmem:[#allocation2] sm:$0xff]  }
  0x4d   :  { %368 = vmatprep.mubr.bf16.mxu0 %v2887_v0  ;;  %411 = vmatprep.mubr.bf16.mxu1 %v2887_v0  ;;  %v2374_v2 = vld [vmem:[#allocation5 + $0xec] ss:$16 sps:$4 sm:$0xff]   ;;  %v2376_v3 = vld [vmem:[#allocation5 + $0xe0] ss:$16 sps:$4 sm:$0xff]   ;;  %v2377_v4 = vld [vmem:[#allocation5 + $0xe8] ss:$16 sps:$4 sm:$0xff]  }
  0x4e   :  { %336 = vmatprep.subr.bf16.mxu0 %v2372_v1  ;;  %379 = vmatprep.subr.bf16.mxu1 %v2374_v2  ;;  %v2378_v5 = vld [vmem:[#allocation5 + $0xc4] ss:$16 sps:$4 sm:$0xff]   ;;  %v2380_v6 = vld [vmem:[#allocation5 + $0xcc] ss:$16 sps:$4 sm:$0xff]   ;;  %v2382_v7 = vld [vmem:[#allocation5 + $0xc0] ss:$16 sps:$4 sm:$0xff]  }
  0x4f   :  { %337 = vmatpush1.bf16.msra.mxu0 %v2376_v3  ;;  %380 = vmatpush1.bf16.msra.mxu1 %v2377_v4  ;;  %v2383_v8 = vld [vmem:[#allocation5 + $0xc8] ss:$16 sps:$4 sm:$0xff]   ;;  %v2384_v9 = vld [vmem:[#allocation5 + $0xa4] ss:$16 sps:$4 sm:$0xff]   ;;  %v2386_v10 = vld [vmem:[#allocation5 + $0xac] ss:$16 sps:$4 sm:$0xff]  }
  0x50   :  { %338 = vmatprep.subr.bf16.mxu0 %v2378_v5  ;;  %381 = vmatprep.subr.bf16.mxu1 %v2380_v6  ;;  %v2388_v11 = vld [vmem:[#allocation5 + $0xa0] ss:$16 sps:$4 sm:$0xff]   ;;  %v2389_v12 = vld [vmem:[#allocation5 + $0xa8] ss:$16 sps:$4 sm:$0xff]   ;;  %v2390_v13 = vld [vmem:[#allocation5 + $0x84] ss:$16 sps:$4 sm:$0xff]  }
  0x51   :  { %v2392_v14 = vld [vmem:[#allocation5 + $0x8c] ss:$16 sps:$4 sm:$0xff]   ;;  %v2394_v15 = vld [vmem:[#allocation5 + $0x80] ss:$16 sps:$4 sm:$0xff]   ;;  %v2395_v16 = vld [vmem:[#allocation5 + $0x88] ss:$16 sps:$4 sm:$0xff]  }
  0x52   :  { %v2396_v17 = vld [vmem:[#allocation5 + $0x64] ss:$16 sps:$4 sm:$0xff]   ;;  %v2398_v18 = vld [vmem:[#allocation5 + $0x6c] ss:$16 sps:$4 sm:$0xff]   ;;  %v2400_v19 = vld [vmem:[#allocation5 + $0x60] ss:$16 sps:$4 sm:$0xff]  }
  0x53   :  { %339 = vmatpush1.bf16.msra.mxu0 %v2382_v7  ;;  %382 = vmatpush1.bf16.msra.mxu1 %v2383_v8  ;;  %v2401_v20 = vld [vmem:[#allocation5 + $0x68] ss:$16 sps:$4 sm:$0xff]   ;;  %v2402_v21 = vld [vmem:[#allocation5 + $0x44] ss:$16 sps:$4 sm:$0xff]   ;;  %v2404_v22 = vld [vmem:[#allocation5 + $0x4c] ss:$16 sps:$4 sm:$0xff]  }
  0x54   :  { %340 = vmatprep.subr.bf16.mxu0 %v2384_v9  ;;  %383 = vmatprep.subr.bf16.mxu1 %v2386_v10  ;;  %v2406_v23 = vld [vmem:[#allocation5 + $0x40] ss:$16 sps:$4 sm:$0xff]   ;;  %v2407_v24 = vld [vmem:[#allocation5 + $0x48] ss:$16 sps:$4 sm:$0xff]   ;;  %v2408_v25 = vld [vmem:[#allocation5 + $0x24] ss:$16 sps:$4 sm:$0xff]  }
  0x55   :  { %v2410_v26 = vld [vmem:[#allocation5 + $0x2c] ss:$16 sps:$4 sm:$0xff]   ;;  %v2412_v27 = vld [vmem:[#allocation5 + $0x20] ss:$16 sps:$4 sm:$0xff]   ;;  %v2413_v28 = vld [vmem:[#allocation5 + $0x28] ss:$16 sps:$4 sm:$0xff]  }
  0x56   :  { %v2414_v29 = vld [vmem:[#allocation5 + $0x4] ss:$16 sps:$4 sm:$0xff]   ;;  %v2416_v30 = vld [vmem:[#allocation5 + $0xc] ss:$16 sps:$4 sm:$0xff]   ;;  %v2418_v31 = vld [vmem:[#allocation5] ss:$16 sps:$4 sm:$0xff]  }
  0x57   :  { %341 = vmatpush1.bf16.msra.mxu0 %v2388_v11  ;;  %384 = vmatpush1.bf16.msra.mxu1 %v2389_v12  ;;  %v2419_v32 = vld [vmem:[#allocation5 + $0x8] ss:$16 sps:$4 sm:$0xff]   ;;  %v2421_v36 = vld [vmem:[#allocation8 + $0xe0] ss:$16 sps:$4 sm:$0xff]   ;;  %s2888_s22 = smov [#allocation13]  }
  0x58   :  { %342 = vmatprep.subr.bf16.mxu0 %v2390_v13  ;;  %385 = vmatprep.subr.bf16.mxu1 %v2392_v14  ;;  %v2423_v33 = vld [vmem:[#allocation8 + $0xe4] ss:$16 sps:$4 sm:$0xff]   ;;  %v2424_v37 = vld [vmem:[#allocation8 + $0x2e0] ss:$16 sps:$4 sm:$0xff]   ;;  %s2079_s23 = sshll.u32 %s2888_s22, 4  ;;  %s2080_s23 = int_to_ptr.vmem [resolvable:$true] %s2079_s23 }
  0x59   :  { %v2426_v34 = vld [vmem:[#allocation8 + $0x2e4] ss:$16 sps:$4 sm:$0xff]   ;;  %v2427_v40 = vld [vmem:[#allocation8 + $0xc0] ss:$16 sps:$4 sm:$0xff]   ;;  %s2845_s1 = scalar_lea.vmem %s2080_s23, 256  ;;  %p2850_p3 = scmp.lt.s32.totalorder %s2080_s23, %s2080_s23 }
  0x5a   :  { %v2429_v38 = vld [vmem:[#allocation8 + $0xc4] ss:$16 sps:$4 sm:$0xff]   ;;  %v2430_v41 = vld [vmem:[#allocation8 + $0x2c0] ss:$16 sps:$4 sm:$0xff]   ;;  %p2846_p2 = scmp.ne.s32.totalorder %s2080_s23, %s2845_s1  ;;  %p2851_p4 = scmp.lt.s32.totalorder %s2845_s1, %s2845_s1 }
  0x5b   :  { %343 = vmatpush1.bf16.msra.mxu0 %v2394_v15  ;;  %386 = vmatpush1.bf16.msra.mxu1 %v2395_v16  ;;  %v2432_v39 = vld [vmem:[#allocation8 + $0x2c4] ss:$16 sps:$4 sm:$0xff]   ;;  %v2433_v44 = vld [vmem:[#allocation8 + $0xa0] ss:$16 sps:$4 sm:$0xff]  }
  0x5c   :  { %344 = vmatprep.subr.bf16.mxu0 %v2396_v17  ;;  %387 = vmatprep.subr.bf16.mxu1 %v2398_v18  ;;  %v2435_v42 = vld [vmem:[#allocation8 + $0xa4] ss:$16 sps:$4 sm:$0xff]   ;;  %v2436_v45 = vld [vmem:[#allocation8 + $0x2a0] ss:$16 sps:$4 sm:$0xff]   ;;  %p2852_p5 = por %p2851_p4, %p2850_p3 }
  0x5d   :  { %v2438_v43 = vld [vmem:[#allocation8 + $0x2a4] ss:$16 sps:$4 sm:$0xff]   ;;  %v2439_v48 = vld [vmem:[#allocation8 + $0x80] ss:$16 sps:$4 sm:$0xff]  }
  0x5e   :  { %v2441_v46 = vld [vmem:[#allocation8 + $0x84] ss:$16 sps:$4 sm:$0xff]   ;;  %v2442_v49 = vld [vmem:[#allocation8 + $0x280] ss:$16 sps:$4 sm:$0xff]   ;;  %p2853_p6 = pnand %p2852_p5, %p2846_p2 }
  0x5f   :  { %345 = vmatpush1.bf16.msra.mxu0 %v2400_v19  ;;  %388 = vmatpush1.bf16.msra.mxu1 %v2401_v20  ;;  %v2444_v47 = vld [vmem:[#allocation8 + $0x284] ss:$16 sps:$4 sm:$0xff]   ;;  %v2445_v52 = vld [vmem:[#allocation8 + $0x60] ss:$16 sps:$4 sm:$0xff]  }
  0x60   :  { %346 = vmatprep.subr.bf16.mxu0 %v2402_v21  ;;  %389 = vmatprep.subr.bf16.mxu1 %v2404_v22  ;;  %v2447_v50 = vld [vmem:[#allocation8 + $0x64] ss:$16 sps:$4 sm:$0xff]   ;;  %v2448_v53 = vld [vmem:[#allocation8 + $0x260] ss:$16 sps:$4 sm:$0xff]  }
  0x61   :  { %v2450_v51 = vld [vmem:[#allocation8 + $0x264] ss:$16 sps:$4 sm:$0xff]   ;;  %v2451_v56 = vld [vmem:[#allocation8 + $0x40] ss:$16 sps:$4 sm:$0xff]  }
  0x62   :  { %v2453_v54 = vld [vmem:[#allocation8 + $0x44] ss:$16 sps:$4 sm:$0xff]   ;;  %v2454_v57 = vld [vmem:[#allocation8 + $0x240] ss:$16 sps:$4 sm:$0xff]  }
  0x63   :  { %347 = vmatpush1.bf16.msra.mxu0 %v2406_v23  ;;  %390 = vmatpush1.bf16.msra.mxu1 %v2407_v24  ;;  %v2456_v55 = vld [vmem:[#allocation8 + $0x244] ss:$16 sps:$4 sm:$0xff]   ;;  %v2457_v60 = vld [vmem:[#allocation8 + $0x20] ss:$16 sps:$4 sm:$0xff]  }
  0x64   :  { %348 = vmatprep.subr.bf16.mxu0 %v2408_v25  ;;  %391 = vmatprep.subr.bf16.mxu1 %v2410_v26  ;;  %v2459_v58 = vld [vmem:[#allocation8 + $0x24] ss:$16 sps:$4 sm:$0xff]   ;;  %v2460_v61 = vld [vmem:[#allocation8 + $0x220] ss:$16 sps:$4 sm:$0xff]  }
  0x65   :  { %v2462_v59 = vld [vmem:[#allocation8 + $0x224] ss:$16 sps:$4 sm:$0xff]   ;;  %v2463_v0 = vld [vmem:[#allocation8] ss:$16 sps:$4 sm:$0xff]  }
  0x66   :  { %v2465_v62 = vld [vmem:[#allocation8 + $0x4] ss:$16 sps:$4 sm:$0xff]   ;;  %v2466_v1 = vld [vmem:[#allocation8 + $0x200] ss:$16 sps:$4 sm:$0xff]  }
  0x67   :  { %349 = vmatpush1.bf16.msra.mxu0 %v2412_v27  ;;  %392 = vmatpush1.bf16.msra.mxu1 %v2413_v28  ;;  %v2468_v63 = vld [vmem:[#allocation8 + $0x204] ss:$16 sps:$4 sm:$0xff]   ;;  %v2469_v4 = vld [vmem:[#allocation8 + $0x1e0] ss:$16 sps:$4 sm:$0xff]  }
  0x68   :  { %350 = vmatprep.subr.bf16.mxu0 %v2414_v29  ;;  %393 = vmatprep.subr.bf16.mxu1 %v2416_v30  ;;  %v2471_v2 = vld [vmem:[#allocation8 + $0x1e4] ss:$16 sps:$4 sm:$0xff]   ;;  %v2472_v5 = vld [vmem:[#allocation8 + $0x3e0] ss:$16 sps:$4 sm:$0xff]  }
  0x69   :  { %v2474_v3 = vld [vmem:[#allocation8 + $0x3e4] ss:$16 sps:$4 sm:$0xff]   ;;  %v2475_v8 = vld [vmem:[#allocation8 + $0x1c0] ss:$16 sps:$4 sm:$0xff]  }
  0x6a   :  { %v2477_v6 = vld [vmem:[#allocation8 + $0x1c4] ss:$16 sps:$4 sm:$0xff]   ;;  %v2478_v9 = vld [vmem:[#allocation8 + $0x3c0] ss:$16 sps:$4 sm:$0xff]  }
  0x6b   :  { %351 = vmatpush1.bf16.msra.mxu0 %v2418_v31  ;;  %394 = vmatpush1.bf16.msra.mxu1 %v2419_v32  ;;  %v2480_v7 = vld [vmem:[#allocation8 + $0x3c4] ss:$16 sps:$4 sm:$0xff]   ;;  %v2481_v12 = vld [vmem:[#allocation8 + $0x1a0] ss:$16 sps:$4 sm:$0xff]  }
  0x6c   :  { %1224 = vmatprep.subr.bf16.mxu0 %v2423_v33  ;;  %1267 = vmatprep.subr.bf16.mxu1 %v2426_v34  ;;  %v2483_v10 = vld [vmem:[#allocation8 + $0x1a4] ss:$16 sps:$4 sm:$0xff]   ;;  %v2484_v13 = vld [vmem:[#allocation8 + $0x3a0] ss:$16 sps:$4 sm:$0xff]   ;;  %v2519_v34 = vld [vmem:[#allocation8 + $0xec] ss:$16 sps:$4 sm:$0xff]  }
  0x6d   :  { %v2486_v11 = vld [vmem:[#allocation8 + $0x3a4] ss:$16 sps:$4 sm:$0xff]   ;;  %v2487_v16 = vld [vmem:[#allocation8 + $0x180] ss:$16 sps:$4 sm:$0xff]  }
  0x6e   :  { %369 = vmatmul.mubr.bf16.vlgmr.msra.gmra.mxu0 %v2420_v35  ;;  %412 = vmatmul.mubr.bf16.vlgmr.msra.gmra.mxu1 %v2420_v35  ;;  %v2489_v14 = vld [vmem:[#allocation8 + $0x184] ss:$16 sps:$4 sm:$0xff]   ;;  %v2490_v17 = vld [vmem:[#allocation8 + $0x380] ss:$16 sps:$4 sm:$0xff]   ;;  %v2522_v35 = vld [vmem:[#allocation8 + $0x2ec] ss:$16 sps:$4 sm:$0xff]  }
  0x6f   :  { %1225 = vmatpush1.bf16.msra.mxu0 %v2421_v36  ;;  %1268 = vmatpush1.bf16.msra.mxu1 %v2424_v37  ;;  %v2492_v15 = vld [vmem:[#allocation8 + $0x384] ss:$16 sps:$4 sm:$0xff]   ;;  %v2493_v20 = vld [vmem:[#allocation8 + $0x160] ss:$16 sps:$4 sm:$0xff]   ;;  %v150_v36 = vlaneseq }
  0x70   :  { %1226 = vmatprep.subr.bf16.mxu0 %v2429_v38  ;;  %1269 = vmatprep.subr.bf16.mxu1 %v2432_v39  ;;  %v2495_v18 = vld [vmem:[#allocation8 + $0x164] ss:$16 sps:$4 sm:$0xff]   ;;  %v2496_v21 = vld [vmem:[#allocation8 + $0x360] ss:$16 sps:$4 sm:$0xff]  }
  0x71   :  { %v2498_v19 = vld [vmem:[#allocation8 + $0x364] ss:$16 sps:$4 sm:$0xff]   ;;  %v2499_v24 = vld [vmem:[#allocation8 + $0x140] ss:$16 sps:$4 sm:$0xff]   ;;  %v2966_v37 = vshrl.u32 %v150_v36, 7 }
  0x72   :  { %v2501_v22 = vld [vmem:[#allocation8 + $0x144] ss:$16 sps:$4 sm:$0xff]   ;;  %v2502_v25 = vld [vmem:[#allocation8 + $0x340] ss:$16 sps:$4 sm:$0xff]   ;;  %v2556_v36 = vld [vmem:[#allocation8 + $0x228] ss:$16 sps:$4 sm:$0xff]  }
  0x73   :  { %1227 = vmatpush1.bf16.msra.mxu0 %v2427_v40  ;;  %1270 = vmatpush1.bf16.msra.mxu1 %v2430_v41  ;;  %v2504_v23 = vld [vmem:[#allocation8 + $0x344] ss:$16 sps:$4 sm:$0xff]   ;;  %v2505_v28 = vld [vmem:[#allocation8 + $0x120] ss:$16 sps:$4 sm:$0xff]   ;;  %v2969_v38 = vsub.s32 1, %v2966_v37  ;;  %v164_v39 = vsub.s32 3, %v2966_v37 }
  0x74   :  { %1228 = vmatprep.subr.bf16.mxu0 %v2435_v42  ;;  %1271 = vmatprep.subr.bf16.mxu1 %v2438_v43  ;;  %v2507_v26 = vld [vmem:[#allocation8 + $0x124] ss:$16 sps:$4 sm:$0xff]   ;;  %v2508_v29 = vld [vmem:[#allocation8 + $0x320] ss:$16 sps:$4 sm:$0xff]   ;;  %v2973_v40 = vsub.s32 0, %v2966_v37  ;;  %v160_v41 = vsub.s32 2, %v2966_v37 }
  0x75   :  { %v2510_v27 = vld [vmem:[#allocation8 + $0x324] ss:$16 sps:$4 sm:$0xff]   ;;  %v2511_v32 = vld [vmem:[#allocation8 + $0x100] ss:$16 sps:$4 sm:$0xff]   ;;  %v148_v42 = vld [vmem:[#allocation7] sm:$0xf] }
  0x76   :  { %v2513_v30 = vld [vmem:[#allocation8 + $0x104] ss:$16 sps:$4 sm:$0xff]   ;;  %v2514_v33 = vld [vmem:[#allocation8 + $0x300] ss:$16 sps:$4 sm:$0xff]  }
  0x77   :  { %1229 = vmatpush1.bf16.msra.mxu0 %v2433_v44  ;;  %1272 = vmatpush1.bf16.msra.mxu1 %v2436_v45  ;;  %v2516_v31 = vld [vmem:[#allocation8 + $0x304] ss:$16 sps:$4 sm:$0xff]   ;;  %v157_v45 = vrot.slane %v148_v42, %v2969_v38 }
  0x78   :  { %1230 = vmatprep.subr.bf16.mxu0 %v2441_v46  ;;  %1273 = vmatprep.subr.bf16.mxu1 %v2444_v47  ;;  %v165_v46 = vrot.slane %v148_v42, %v164_v39  ;;  %v153_v47 = vrot.slane %v148_v42, %v2973_v40 }
  0x7b   :  { %1231 = vmatpush1.bf16.msra.mxu0 %v2439_v48  ;;  %1274 = vmatpush1.bf16.msra.mxu1 %v2442_v49  ;;  %v161_v48 = vrot.slane %v148_v42, %v160_v41  ;;  %v2561_v42 = vld [vmem:[#allocation8 + $0xc] ss:$16 sps:$4 sm:$0xff]  }
  0x7c   :  { %1232 = vmatprep.subr.bf16.mxu0 %v2447_v50  ;;  %1275 = vmatprep.subr.bf16.mxu1 %v2450_v51 }
  0x7f   :  { %1233 = vmatpush1.bf16.msra.mxu0 %v2445_v52  ;;  %1276 = vmatpush1.bf16.msra.mxu1 %v2448_v53 }
  0x80   :  { %1234 = vmatprep.subr.bf16.mxu0 %v2453_v54  ;;  %1277 = vmatprep.subr.bf16.mxu1 %v2456_v55 }
  0x83   :  { %1235 = vmatpush1.bf16.msra.mxu0 %v2451_v56  ;;  %1278 = vmatpush1.bf16.msra.mxu1 %v2454_v57 }
  0x84   :  { %1236 = vmatprep.subr.bf16.mxu0 %v2459_v58  ;;  %1279 = vmatprep.subr.bf16.mxu1 %v2462_v59 }
  0x87   :  { %1237 = vmatpush1.bf16.msra.mxu0 %v2457_v60  ;;  %1280 = vmatpush1.bf16.msra.mxu1 %v2460_v61 }
  0x88   :  { %1238 = vmatprep.subr.bf16.mxu0 %v2465_v62  ;;  %1281 = vmatprep.subr.bf16.mxu1 %v2468_v63 }
  0x8b   :  { %1239 = vmatpush1.bf16.msra.mxu0 %v2463_v0  ;;  %1282 = vmatpush1.bf16.msra.mxu1 %v2466_v1 }
  0x8c   :  { %1240 = vmatprep.subr.bf16.mxu0 %v2471_v2  ;;  %1283 = vmatprep.subr.bf16.mxu1 %v2474_v3 }
  0x8f   :  { %1241 = vmatpush2.bf16.msra.mxu0 %v2469_v4  ;;  %1284 = vmatpush2.bf16.msra.mxu1 %v2472_v5 }
  0x90   :  { %1242 = vmatprep.subr.bf16.mxu0 %v2477_v6  ;;  %1285 = vmatprep.subr.bf16.mxu1 %v2480_v7 }
  0x93   :  { %1243 = vmatpush2.bf16.msra.mxu0 %v2475_v8  ;;  %1286 = vmatpush2.bf16.msra.mxu1 %v2478_v9  ;;  %v2517_v9 = vld [vmem:[#allocation8 + $0xe8] ss:$16 sps:$4 sm:$0xff]  }
  0x94   :  { %1244 = vmatprep.subr.bf16.mxu0 %v2483_v10  ;;  %1287 = vmatprep.subr.bf16.mxu1 %v2486_v11  ;;  %v2520_v10 = vld [vmem:[#allocation8 + $0x2e8] ss:$16 sps:$4 sm:$0xff]  }
  0x97   :  { %1245 = vmatpush2.bf16.msra.mxu0 %v2481_v12  ;;  %1288 = vmatpush2.bf16.msra.mxu1 %v2484_v13  ;;  %v2525_v13 = vld [vmem:[#allocation8 + $0xcc] ss:$16 sps:$4 sm:$0xff]  }
  0x98   :  { %1246 = vmatprep.subr.bf16.mxu0 %v2489_v14  ;;  %1289 = vmatprep.subr.bf16.mxu1 %v2492_v15  ;;  %v2528_v14 = vld [vmem:[#allocation8 + $0x2cc] ss:$16 sps:$4 sm:$0xff]   ;;  %v2523_v15 = vld [vmem:[#allocation8 + $0xc8] ss:$16 sps:$4 sm:$0xff]  }
  0x9b   :  { %1247 = vmatpush2.bf16.msra.mxu0 %v2487_v16  ;;  %1290 = vmatpush2.bf16.msra.mxu1 %v2490_v17  ;;  %v2526_v16 = vld [vmem:[#allocation8 + $0x2c8] ss:$16 sps:$4 sm:$0xff]   ;;  %v2531_v17 = vld [vmem:[#allocation8 + $0xac] ss:$16 sps:$4 sm:$0xff]  }
  0x9c   :  { %1248 = vmatprep.subr.bf16.mxu0 %v2495_v18  ;;  %1291 = vmatprep.subr.bf16.mxu1 %v2498_v19  ;;  %v2534_v18 = vld [vmem:[#allocation8 + $0x2ac] ss:$16 sps:$4 sm:$0xff]   ;;  %v2529_v19 = vld [vmem:[#allocation8 + $0xa8] ss:$16 sps:$4 sm:$0xff]  }
  0x9f   :  { %1249 = vmatpush2.bf16.msra.mxu0 %v2493_v20  ;;  %1292 = vmatpush2.bf16.msra.mxu1 %v2496_v21  ;;  %v2532_v20 = vld [vmem:[#allocation8 + $0x2a8] ss:$16 sps:$4 sm:$0xff]   ;;  %v2537_v21 = vld [vmem:[#allocation8 + $0x8c] ss:$16 sps:$4 sm:$0xff]  }
  0xa0   :  { %1250 = vmatprep.subr.bf16.mxu0 %v2501_v22  ;;  %1293 = vmatprep.subr.bf16.mxu1 %v2504_v23  ;;  %v2540_v22 = vld [vmem:[#allocation8 + $0x28c] ss:$16 sps:$4 sm:$0xff]   ;;  %v2535_v23 = vld [vmem:[#allocation8 + $0x88] ss:$16 sps:$4 sm:$0xff]  }
  0xa3   :  { %1251 = vmatpush2.bf16.msra.mxu0 %v2499_v24  ;;  %1294 = vmatpush2.bf16.msra.mxu1 %v2502_v25  ;;  %v2538_v24 = vld [vmem:[#allocation8 + $0x288] ss:$16 sps:$4 sm:$0xff]   ;;  %v2543_v25 = vld [vmem:[#allocation8 + $0x6c] ss:$16 sps:$4 sm:$0xff]  }
  0xa4   :  { %1252 = vmatprep.subr.bf16.mxu0 %v2507_v26  ;;  %1295 = vmatprep.subr.bf16.mxu1 %v2510_v27  ;;  %v2546_v26 = vld [vmem:[#allocation8 + $0x26c] ss:$16 sps:$4 sm:$0xff]   ;;  %v2541_v27 = vld [vmem:[#allocation8 + $0x68] ss:$16 sps:$4 sm:$0xff]  }
  0xa7   :  { %1253 = vmatpush2.bf16.msra.mxu0 %v2505_v28  ;;  %1296 = vmatpush2.bf16.msra.mxu1 %v2508_v29  ;;  %v2544_v28 = vld [vmem:[#allocation8 + $0x268] ss:$16 sps:$4 sm:$0xff]   ;;  %v2549_v29 = vld [vmem:[#allocation8 + $0x4c] ss:$16 sps:$4 sm:$0xff]  }
  0xa8   :  { %1254 = vmatprep.subr.bf16.mxu0 %v2513_v30  ;;  %1297 = vmatprep.subr.bf16.mxu1 %v2516_v31  ;;  %v2552_v30 = vld [vmem:[#allocation8 + $0x24c] ss:$16 sps:$4 sm:$0xff]   ;;  %v2547_v31 = vld [vmem:[#allocation8 + $0x48] ss:$16 sps:$4 sm:$0xff]  }
  0xab   :  { %1255 = vmatpush2.bf16.msra.mxu0 %v2511_v32  ;;  %1298 = vmatpush2.bf16.msra.mxu1 %v2514_v33  ;;  %v2550_v32 = vld [vmem:[#allocation8 + $0x248] ss:$16 sps:$4 sm:$0xff]   ;;  %v2555_v33 = vld [vmem:[#allocation8 + $0x2c] ss:$16 sps:$4 sm:$0xff]  }
  0xac   :  { %1310 = vmatprep.subr.bf16.mxu0 %v2519_v34  ;;  %1353 = vmatprep.subr.bf16.mxu1 %v2522_v35  ;;  %v2558_v34 = vld [vmem:[#allocation8 + $0x22c] ss:$16 sps:$4 sm:$0xff]   ;;  %v2553_v35 = vld [vmem:[#allocation8 + $0x28] ss:$16 sps:$4 sm:$0xff]  }
 0x12e   :  { %v370_v43 = vpop.f32.mrf.mxu0  ;;  %v413_v44 = vpop.f32.mrf.mxu1 }
 0x12f   :  { %v371_v57 = vadd.f32 %v370_v43, %v153_v47  ;;  %v414_v58 = vadd.f32 %v413_v44, %v161_v48  ;;  %v2564_v43 = vld [vmem:[#allocation8 + $0x20c] ss:$16 sps:$4 sm:$0xff]   ;;  %v2559_v44 = vld [vmem:[#allocation8 + $0x8] ss:$16 sps:$4 sm:$0xff]  }
 0x130   :  { %v372_v49 = vpop.f32.mrf.mxu0  ;;  %v415_v50 = vpop.f32.mrf.mxu1 }
 0x131   :  { %v373_v53 = vadd.f32 %v372_v49, %v157_v45  ;;  %v416_v54 = vadd.f32 %v415_v50, %v165_v46  ;;  %v422_v5 = vmax.f32 %v371_v57, 0.0  ;;  %v424_v6 = vmax.f32 %v414_v58, 0.0  ;;  %v2568_v49 = vld [vmem:[#allocation8 + $0x3e8] ss:$16 sps:$4 sm:$0xff]   ;;  %v2573_v50 = vld [vmem:[#allocation8 + $0x1cc] ss:$16 sps:$4 sm:$0xff]  }
 0x132   :  { %v374_v51 = vpop.f32.mrf.mxu0  ;;  %v417_v52 = vpop.f32.mrf.mxu1  ;;  %v2580_v57 = vld [vmem:[#allocation8 + $0x3a8] ss:$16 sps:$4 sm:$0xff]   ;;  %v2585_v58 = vld [vmem:[#allocation8 + $0x18c] ss:$16 sps:$4 sm:$0xff]  }
 0x133   :  { %v375_v55 = vadd.f32 %v374_v51, %v153_v47  ;;  %v418_v56 = vadd.f32 %v417_v52, %v161_v48  ;;  %v423_v1 = vmax.f32 %v373_v53, 0.0  ;;  %v425_v2 = vmax.f32 %v416_v54, 0.0  ;;  %v2570_v47 = vld [vmem:[#allocation8 + $0x3ec] ss:$16 sps:$4 sm:$0xff]   ;;  %v2565_v48 = vld [vmem:[#allocation8 + $0x1e8] ss:$16 sps:$4 sm:$0xff]  }
 0x134   :  { %v376_v59 = vpop.f32.mrf.mxu0  ;;  %v419_v60 = vpop.f32.mrf.mxu1  ;;  %v2576_v51 = vld [vmem:[#allocation8 + $0x3cc] ss:$16 sps:$4 sm:$0xff]   ;;  %v2571_v52 = vld [vmem:[#allocation8 + $0x1c8] ss:$16 sps:$4 sm:$0xff]  }
 0x135   :  { %v377_v61 = vadd.f32 %v376_v59, %v157_v45  ;;  %v420_v62 = vadd.f32 %v419_v60, %v165_v46  ;;  %v426_v63 = vmax.f32 %v375_v55, 0.0  ;;  %v428_v0 = vmax.f32 %v418_v56, 0.0  ;;  %v2562_v45 = vld [vmem:[#allocation8 + $0x208] ss:$16 sps:$4 sm:$0xff]   ;;  %v2567_v46 = vld [vmem:[#allocation8 + $0x1ec] ss:$16 sps:$4 sm:$0xff]  }
 0x136   :  { %v2574_v53 = vld [vmem:[#allocation8 + $0x3c8] ss:$16 sps:$4 sm:$0xff]   ;;  %v2579_v54 = vld [vmem:[#allocation8 + $0x1ac] ss:$16 sps:$4 sm:$0xff]  }
 0x137   :  { %v427_v3 = vmax.f32 %v377_v61, 0.0  ;;  %v429_v4 = vmax.f32 %v420_v62, 0.0  ;;  %v2982_v11 = vpack.c.bf16 %v426_v63, %v422_v5  ;;  %v2984_v12 = vpack.c.bf16 %v428_v0, %v424_v6  ;;  %v2582_v55 = vld [vmem:[#allocation8 + $0x3ac] ss:$16 sps:$4 sm:$0xff]   ;;  %v2577_v56 = vld [vmem:[#allocation8 + $0x1a8] ss:$16 sps:$4 sm:$0xff]  }
 0x138   :  { %v2588_v59 = vld [vmem:[#allocation8 + $0x38c] ss:$16 sps:$4 sm:$0xff]   ;;  %v2583_v60 = vld [vmem:[#allocation8 + $0x188] ss:$16 sps:$4 sm:$0xff]  }
 0x139   :  { %v431_v7 = vpack.c.bf16 %v427_v3, %v423_v1  ;;  %v433_v8 = vpack.c.bf16 %v429_v4, %v425_v2  ;;  %v2586_v61 = vld [vmem:[#allocation8 + $0x388] ss:$16 sps:$4 sm:$0xff]   ;;  %v2591_v62 = vld [vmem:[#allocation8 + $0x16c] ss:$16 sps:$4 sm:$0xff]  }
 0x13a   :  { %v2594_v63 = vld [vmem:[#allocation8 + $0x36c] ss:$16 sps:$4 sm:$0xff]   ;;  %v2589_v0 = vld [vmem:[#allocation8 + $0x168] ss:$16 sps:$4 sm:$0xff]  }
 0x13b   :  { %1256 = vmatprep.mubr.bf16.mxu0 %v431_v7  ;;  %1299 = vmatprep.mubr.bf16.mxu1 %v433_v8  ;;  %v2592_v1 = vld [vmem:[#allocation8 + $0x368] ss:$16 sps:$4 sm:$0xff]   ;;  %v2597_v2 = vld [vmem:[#allocation8 + $0x14c] ss:$16 sps:$4 sm:$0xff]  }
 0x13c   :  { %1257 = vmatmul.mubr.bf16.vlgmr.msra.gmra.mxu0 %v2982_v11  ;;  %1300 = vmatmul.mubr.bf16.vlgmr.msra.gmra.mxu1 %v2984_v12  ;;  %v2600_v3 = vld [vmem:[#allocation8 + $0x34c] ss:$16 sps:$4 sm:$0xff]   ;;  %v2595_v4 = vld [vmem:[#allocation8 + $0x148] ss:$16 sps:$4 sm:$0xff]  }
 0x13d   :  { %1311 = vmatpush1.bf16.msra.mxu0 %v2517_v9  ;;  %1354 = vmatpush1.bf16.msra.mxu1 %v2520_v10  ;;  %v2598_v5 = vld [vmem:[#allocation8 + $0x348] ss:$16 sps:$4 sm:$0xff]   ;;  %v2603_v6 = vld [vmem:[#allocation8 + $0x12c] ss:$16 sps:$4 sm:$0xff]  }
 0x13e   :  { %1342 = vmatprep.mubr.bf16.mxu0 %v431_v7  ;;  %1385 = vmatprep.mubr.bf16.mxu1 %v433_v8  ;;  %v2606_v7 = vld [vmem:[#allocation8 + $0x32c] ss:$16 sps:$4 sm:$0xff]   ;;  %v2601_v8 = vld [vmem:[#allocation8 + $0x128] ss:$16 sps:$4 sm:$0xff]  }
 0x13f   :  { %1312 = vmatprep.subr.bf16.mxu0 %v2525_v13  ;;  %1355 = vmatprep.subr.bf16.mxu1 %v2528_v14  ;;  %v2604_v9 = vld [vmem:[#allocation8 + $0x328] ss:$16 sps:$4 sm:$0xff]   ;;  %v2609_v10 = vld [vmem:[#allocation8 + $0x10c] ss:$16 sps:$4 sm:$0xff]  }
 0x140   :  { %v2612_v13 = vld [vmem:[#allocation8 + $0x30c] ss:$16 sps:$4 sm:$0xff]   ;;  %v2607_v14 = vld [vmem:[#allocation8 + $0x108] ss:$16 sps:$4 sm:$0xff]  }
 0x141   :  { %1313 = vmatpush1.bf16.msra.mxu0 %v2523_v15  ;;  %1356 = vmatpush1.bf16.msra.mxu1 %v2526_v16  ;;  %v2610_v15 = vld [vmem:[#allocation8 + $0x308] ss:$16 sps:$4 sm:$0xff]   ;;  %v2615_v16 = vld [vmem:[#allocation10 + $0x74] ss:$8 sps:$4 sm:$0xff]  }
 0x142   :  { %1314 = vmatprep.subr.bf16.mxu0 %v2531_v17  ;;  %1357 = vmatprep.subr.bf16.mxu1 %v2534_v18  ;;  %v2613_v17 = vld [vmem:[#allocation10 + $0x70] ss:$8 sps:$4 sm:$0xff]   ;;  %v2618_v18 = vld [vmem:[#allocation10 + $0x64] ss:$8 sps:$4 sm:$0xff]  }
 0x145   :  { %1315 = vmatpush1.bf16.msra.mxu0 %v2529_v19  ;;  %1358 = vmatpush1.bf16.msra.mxu1 %v2532_v20  ;;  %v2616_v19 = vld [vmem:[#allocation10 + $0x60] ss:$8 sps:$4 sm:$0xff]   ;;  %v2621_v20 = vld [vmem:[#allocation10 + $0x54] ss:$8 sps:$4 sm:$0xff]  }
 0x146   :  { %1316 = vmatprep.subr.bf16.mxu0 %v2537_v21  ;;  %1359 = vmatprep.subr.bf16.mxu1 %v2540_v22  ;;  %v2619_v21 = vld [vmem:[#allocation10 + $0x50] ss:$8 sps:$4 sm:$0xff]   ;;  %v2624_v22 = vld [vmem:[#allocation10 + $0x44] ss:$8 sps:$4 sm:$0xff]  }
 0x149   :  { %1317 = vmatpush1.bf16.msra.mxu0 %v2535_v23  ;;  %1360 = vmatpush1.bf16.msra.mxu1 %v2538_v24  ;;  %v2622_v23 = vld [vmem:[#allocation10 + $0x40] ss:$8 sps:$4 sm:$0xff]   ;;  %v2627_v24 = vld [vmem:[#allocation10 + $0x34] ss:$8 sps:$4 sm:$0xff]  }
 0x14a   :  { %1318 = vmatprep.subr.bf16.mxu0 %v2543_v25  ;;  %1361 = vmatprep.subr.bf16.mxu1 %v2546_v26  ;;  %v2625_v25 = vld [vmem:[#allocation10 + $0x30] ss:$8 sps:$4 sm:$0xff]   ;;  %v2630_v26 = vld [vmem:[#allocation10 + $0x24] ss:$8 sps:$4 sm:$0xff]  }
 0x14d   :  { %1319 = vmatpush1.bf16.msra.mxu0 %v2541_v27  ;;  %1362 = vmatpush1.bf16.msra.mxu1 %v2544_v28  ;;  %v2663_v27 = vld [vmem:[#allocation10 + $0x174] ss:$8 sps:$4 sm:$0xff]   ;;  %v2628_v28 = vld [vmem:[#allocation10 + $0x20] ss:$8 sps:$4 sm:$0xff]  }
 0x14e   :  { %1320 = vmatprep.subr.bf16.mxu0 %v2549_v29  ;;  %1363 = vmatprep.subr.bf16.mxu1 %v2552_v30  ;;  %v2664_v29 = vld [vmem:[#allocation10 + $0x160] ss:$8 sps:$4 sm:$0xff]   ;;  %v2633_v30 = vld [vmem:[#allocation10 + $0x14] ss:$8 sps:$4 sm:$0xff]  }
 0x151   :  { %1321 = vmatpush1.bf16.msra.mxu0 %v2547_v31  ;;  %1364 = vmatpush1.bf16.msra.mxu1 %v2550_v32  ;;  %v2669_v31 = vld [vmem:[#allocation10 + $0x154] ss:$8 sps:$4 sm:$0xff]   ;;  %v2631_v32 = vld [vmem:[#allocation10 + $0x10] ss:$8 sps:$4 sm:$0xff]  }
 0x152   :  { %1322 = vmatprep.subr.bf16.mxu0 %v2555_v33  ;;  %1365 = vmatprep.subr.bf16.mxu1 %v2558_v34  ;;  %v2667_v33 = vld [vmem:[#allocation10 + $0x150] ss:$8 sps:$4 sm:$0xff]   ;;  %v2636_v34 = vld [vmem:[#allocation10 + $0x4] ss:$8 sps:$4 sm:$0xff]  }
 0x155   :  { %1323 = vmatpush1.bf16.msra.mxu0 %v2553_v35  ;;  %1366 = vmatpush1.bf16.msra.mxu1 %v2556_v36  ;;  %v2672_v35 = vld [vmem:[#allocation10 + $0x144] ss:$8 sps:$4 sm:$0xff]   ;;  %v2634_v36 = vld [vmem:[#allocation10] ss:$8 sps:$4 sm:$0xff]  }
 0x156   :  { %1324 = vmatprep.subr.bf16.mxu0 %v2561_v42  ;;  %1367 = vmatprep.subr.bf16.mxu1 %v2564_v43  ;;  %v2670_v42 = vld [vmem:[#allocation10 + $0x140] ss:$8 sps:$4 sm:$0xff]   ;;  %v2639_v43 = vld [vmem:[#allocation10 + $0xf4] ss:$8 sps:$4 sm:$0xff]  }
 0x159   :  { %1325 = vmatpush1.bf16.msra.mxu0 %v2559_v44  ;;  %1368 = vmatpush1.bf16.msra.mxu1 %v2562_v45  ;;  %v2675_v44 = vld [vmem:[#allocation10 + $0x134] ss:$8 sps:$4 sm:$0xff]   ;;  %v2637_v45 = vld [vmem:[#allocation10 + $0xf0] ss:$8 sps:$4 sm:$0xff]  }
 0x15a   :  { %1326 = vmatprep.subr.bf16.mxu0 %v2567_v46  ;;  %1369 = vmatprep.subr.bf16.mxu1 %v2570_v47  ;;  %v2673_v46 = vld [vmem:[#allocation10 + $0x130] ss:$8 sps:$4 sm:$0xff]   ;;  %v2642_v47 = vld [vmem:[#allocation10 + $0xe4] ss:$8 sps:$4 sm:$0xff]  }
 0x15d   :  { %1327 = vmatpush2.bf16.msra.mxu0 %v2565_v48  ;;  %1370 = vmatpush2.bf16.msra.mxu1 %v2568_v49  ;;  %v2678_v48 = vld [vmem:[#allocation10 + $0x124] ss:$8 sps:$4 sm:$0xff]   ;;  %v2640_v49 = vld [vmem:[#allocation10 + $0xe0] ss:$8 sps:$4 sm:$0xff]  }
 0x15e   :  { %1328 = vmatprep.subr.bf16.mxu0 %v2573_v50  ;;  %1371 = vmatprep.subr.bf16.mxu1 %v2576_v51  ;;  %v2676_v50 = vld [vmem:[#allocation10 + $0x120] ss:$8 sps:$4 sm:$0xff]   ;;  %v2645_v51 = vld [vmem:[#allocation10 + $0xd4] ss:$8 sps:$4 sm:$0xff]  }
 0x161   :  { %1329 = vmatpush2.bf16.msra.mxu0 %v2571_v52  ;;  %1372 = vmatpush2.bf16.msra.mxu1 %v2574_v53  ;;  %v2681_v52 = vld [vmem:[#allocation10 + $0x114] ss:$8 sps:$4 sm:$0xff]   ;;  %v2643_v53 = vld [vmem:[#allocation10 + $0xd0] ss:$8 sps:$4 sm:$0xff]  }
 0x162   :  { %1330 = vmatprep.subr.bf16.mxu0 %v2579_v54  ;;  %1373 = vmatprep.subr.bf16.mxu1 %v2582_v55  ;;  %v2679_v54 = vld [vmem:[#allocation10 + $0x110] ss:$8 sps:$4 sm:$0xff]   ;;  %v2648_v55 = vld [vmem:[#allocation10 + $0xc4] ss:$8 sps:$4 sm:$0xff]  }
 0x165   :  { %1331 = vmatpush2.bf16.msra.mxu0 %v2577_v56  ;;  %1374 = vmatpush2.bf16.msra.mxu1 %v2580_v57  ;;  %v2684_v56 = vld [vmem:[#allocation10 + $0x104] ss:$8 sps:$4 sm:$0xff]   ;;  %v2646_v57 = vld [vmem:[#allocation10 + $0xc0] ss:$8 sps:$4 sm:$0xff]  }
 0x166   :  { %1332 = vmatprep.subr.bf16.mxu0 %v2585_v58  ;;  %1375 = vmatprep.subr.bf16.mxu1 %v2588_v59  ;;  %v2682_v58 = vld [vmem:[#allocation10 + $0x100] ss:$8 sps:$4 sm:$0xff]   ;;  %v2651_v59 = vld [vmem:[#allocation10 + $0xb4] ss:$8 sps:$4 sm:$0xff]  }
 0x169   :  { %1333 = vmatpush2.bf16.msra.mxu0 %v2583_v60  ;;  %1376 = vmatpush2.bf16.msra.mxu1 %v2586_v61  ;;  %v2687_v60 = vld [vmem:[#allocation10 + $0x1f4] ss:$8 sps:$4 sm:$0xff]   ;;  %v2649_v61 = vld [vmem:[#allocation10 + $0xb0] ss:$8 sps:$4 sm:$0xff]  }
 0x16a   :  { %1334 = vmatprep.subr.bf16.mxu0 %v2591_v62  ;;  %1377 = vmatprep.subr.bf16.mxu1 %v2594_v63  ;;  %v2685_v62 = vld [vmem:[#allocation10 + $0x1f0] ss:$8 sps:$4 sm:$0xff]   ;;  %v2654_v63 = vld [vmem:[#allocation10 + $0xa4] ss:$8 sps:$4 sm:$0xff]  }
 0x16d   :  { %1335 = vmatpush2.bf16.msra.mxu0 %v2589_v0  ;;  %1378 = vmatpush2.bf16.msra.mxu1 %v2592_v1  ;;  %v2690_v0 = vld [vmem:[#allocation10 + $0x1e4] ss:$8 sps:$4 sm:$0xff]   ;;  %v2652_v1 = vld [vmem:[#allocation10 + $0xa0] ss:$8 sps:$4 sm:$0xff]  }
 0x16e   :  { %1336 = vmatprep.subr.bf16.mxu0 %v2597_v2  ;;  %1379 = vmatprep.subr.bf16.mxu1 %v2600_v3  ;;  %v2688_v2 = vld [vmem:[#allocation10 + $0x1e0] ss:$8 sps:$4 sm:$0xff]   ;;  %v2657_v3 = vld [vmem:[#allocation10 + $0x94] ss:$8 sps:$4 sm:$0xff]  }
 0x171   :  { %1337 = vmatpush2.bf16.msra.mxu0 %v2595_v4  ;;  %1380 = vmatpush2.bf16.msra.mxu1 %v2598_v5  ;;  %v2693_v4 = vld [vmem:[#allocation10 + $0x1d4] ss:$8 sps:$4 sm:$0xff]   ;;  %v2655_v5 = vld [vmem:[#allocation10 + $0x90] ss:$8 sps:$4 sm:$0xff]  }
 0x172   :  { %1338 = vmatprep.subr.bf16.mxu0 %v2603_v6  ;;  %1381 = vmatprep.subr.bf16.mxu1 %v2606_v7  ;;  %v2691_v6 = vld [vmem:[#allocation10 + $0x1d0] ss:$8 sps:$4 sm:$0xff]   ;;  %v2660_v7 = vld [vmem:[#allocation10 + $0x84] ss:$8 sps:$4 sm:$0xff]  }
 0x175   :  { %1339 = vmatpush2.bf16.msra.mxu0 %v2601_v8  ;;  %1382 = vmatpush2.bf16.msra.mxu1 %v2604_v9  ;;  %v2696_v8 = vld [vmem:[#allocation10 + $0x1c4] ss:$8 sps:$4 sm:$0xff]   ;;  %v2658_v9 = vld [vmem:[#allocation10 + $0x80] ss:$8 sps:$4 sm:$0xff]  }
 0x176   :  { %1340 = vmatprep.subr.bf16.mxu0 %v2609_v10  ;;  %1383 = vmatprep.subr.bf16.mxu1 %v2612_v13  ;;  %v2694_v10 = vld [vmem:[#allocation10 + $0x1c0] ss:$8 sps:$4 sm:$0xff]   ;;  %v2699_v13 = vld [vmem:[#allocation10 + $0x1b4] ss:$8 sps:$4 sm:$0xff]  }
 0x179   :  { %1341 = vmatpush2.bf16.msra.mxu0 %v2607_v14  ;;  %1384 = vmatpush2.bf16.msra.mxu1 %v2610_v15  ;;  %v2697_v14 = vld [vmem:[#allocation10 + $0x1b0] ss:$8 sps:$4 sm:$0xff]   ;;  %v2702_v15 = vld [vmem:[#allocation10 + $0x1a4] ss:$8 sps:$4 sm:$0xff]  }
 0x17a   :  { %1804 = vmatprep.subr.bf16.mxu0 %v2615_v16  ;;  %1847 = vmatprep.subr.bf16.mxu1 %v2663_v27  ;;  %v2700_v16 = vld [vmem:[#allocation10 + $0x1a0] ss:$8 sps:$4 sm:$0xff]  }
 0x17c   :  { %1343 = vmatmul.mubr.bf16.vlgmr.msra.gmra.mxu0 %v2982_v11  ;;  %1386 = vmatmul.mubr.bf16.vlgmr.msra.gmra.mxu1 %v2984_v12  ;;  %v2661_v11 = vld [vmem:[#allocation10 + $0x170] ss:$8 sps:$4 sm:$0xff]   ;;  %v2666_v12 = vld [vmem:[#allocation10 + $0x164] ss:$8 sps:$4 sm:$0xff]  }
 0x17d   :  { %1805 = vmatpush1.bf16.msra.mxu0 %v2613_v17  ;;  %1848 = vmatpush1.bf16.msra.mxu1 %v2661_v11  ;;  %v2705_v17 = vld [vmem:[#allocation10 + $0x194] ss:$8 sps:$4 sm:$0xff]  }
 0x17e   :  { %1806 = vmatprep.subr.bf16.mxu0 %v2618_v18  ;;  %1849 = vmatprep.subr.bf16.mxu1 %v2666_v12  ;;  %v2703_v18 = vld [vmem:[#allocation10 + $0x190] ss:$8 sps:$4 sm:$0xff]  }
 0x181   :  { %1807 = vmatpush1.bf16.msra.mxu0 %v2616_v19  ;;  %1850 = vmatpush1.bf16.msra.mxu1 %v2664_v29  ;;  %v2708_v19 = vld [vmem:[#allocation10 + $0x184] ss:$8 sps:$4 sm:$0xff]  }
 0x182   :  { %1808 = vmatprep.subr.bf16.mxu0 %v2621_v20  ;;  %1851 = vmatprep.subr.bf16.mxu1 %v2669_v31  ;;  %v2706_v20 = vld [vmem:[#allocation10 + $0x180] ss:$8 sps:$4 sm:$0xff]  }
 0x185   :  { %1809 = vmatpush1.bf16.msra.mxu0 %v2619_v21  ;;  %1852 = vmatpush1.bf16.msra.mxu1 %v2667_v33  ;;  %v562_v21 = vld [vmem:[%s3017_s4] sm:$0xf] }
 0x186   :  { %1810 = vmatprep.subr.bf16.mxu0 %v2624_v22  ;;  %1853 = vmatprep.subr.bf16.mxu1 %v2672_v35  ;;  %v571_v22 = vrot.slane %v562_v21, %v2969_v38 }
 0x189   :  { %1811 = vmatpush1.bf16.msra.mxu0 %v2622_v23  ;;  %1854 = vmatpush1.bf16.msra.mxu1 %v2670_v42  ;;  %v567_v23 = vrot.slane %v562_v21, %v2973_v40 }
 0x18a   :  { %1812 = vmatprep.subr.bf16.mxu0 %v2627_v24  ;;  %1855 = vmatprep.subr.bf16.mxu1 %v2675_v44 }
 0x18d   :  { %1813 = vmatpush1.bf16.msra.mxu0 %v2625_v25  ;;  %1856 = vmatpush1.bf16.msra.mxu1 %v2673_v46 }
 0x18e   :  { %1814 = vmatprep.subr.bf16.mxu0 %v2630_v26  ;;  %1857 = vmatprep.subr.bf16.mxu1 %v2678_v48 }
 0x191   :  { %1815 = vmatpush1.bf16.msra.mxu0 %v2628_v28  ;;  %1858 = vmatpush1.bf16.msra.mxu1 %v2676_v50  ;;  %v575_v50 = vrot.slane %v562_v21, %v160_v41 }
 0x192   :  { %1816 = vmatprep.subr.bf16.mxu0 %v2633_v30  ;;  %1859 = vmatprep.subr.bf16.mxu1 %v2681_v52 }
 0x195   :  { %1817 = vmatpush1.bf16.msra.mxu0 %v2631_v32  ;;  %1860 = vmatpush1.bf16.msra.mxu1 %v2679_v54 }
 0x196   :  { %1818 = vmatprep.subr.bf16.mxu0 %v2636_v34  ;;  %1861 = vmatprep.subr.bf16.mxu1 %v2684_v56 }
 0x199   :  { %1819 = vmatpush1.bf16.msra.mxu0 %v2634_v36  ;;  %1862 = vmatpush1.bf16.msra.mxu1 %v2682_v58 }
 0x19a   :  { %1820 = vmatprep.subr.bf16.mxu0 %v2639_v43  ;;  %1863 = vmatprep.subr.bf16.mxu1 %v2687_v60 }
 0x19d   :  { %1821 = vmatpush2.bf16.msra.mxu0 %v2637_v45  ;;  %1864 = vmatpush2.bf16.msra.mxu1 %v2685_v62 }
 0x19e   :  { %1822 = vmatprep.subr.bf16.mxu0 %v2642_v47  ;;  %1865 = vmatprep.subr.bf16.mxu1 %v2690_v0 }
 0x1a1   :  { %1823 = vmatpush2.bf16.msra.mxu0 %v2640_v49  ;;  %1866 = vmatpush2.bf16.msra.mxu1 %v2688_v2  ;;  %v579_v49 = vrot.slane %v562_v21, %v164_v39  ;;  %v2722_v21 = vld [vmem:[#allocation11 + $0x8] sm:$0xff]  }
 0x1a2   :  { %1824 = vmatprep.subr.bf16.mxu0 %v2645_v51  ;;  %1867 = vmatprep.subr.bf16.mxu1 %v2693_v4 }
 0x1a5   :  { %1825 = vmatpush2.bf16.msra.mxu0 %v2643_v53  ;;  %1868 = vmatpush2.bf16.msra.mxu1 %v2691_v6  ;;  %v2709_v6 = vld [vmem:[#allocation11 + $0x78] sm:$0xff]  }
 0x1a6   :  { %1826 = vmatprep.subr.bf16.mxu0 %v2648_v55  ;;  %1869 = vmatprep.subr.bf16.mxu1 %v2696_v8  ;;  %v2711_v8 = vld [vmem:[#allocation11 + $0x70] sm:$0xff]  }
 0x1a9   :  { %1827 = vmatpush2.bf16.msra.mxu0 %v2646_v57  ;;  %1870 = vmatpush2.bf16.msra.mxu1 %v2694_v10  ;;  %v2713_v10 = vld [vmem:[#allocation11 + $0x68] sm:$0xff]  }
 0x1aa   :  { %1828 = vmatprep.subr.bf16.mxu0 %v2651_v59  ;;  %1871 = vmatprep.subr.bf16.mxu1 %v2699_v13  ;;  %v2714_v13 = vld [vmem:[#allocation11 + $0x28] sm:$0xff]  }
 0x1ad   :  { %1829 = vmatpush2.bf16.msra.mxu0 %v2649_v61  ;;  %1872 = vmatpush2.bf16.msra.mxu1 %v2697_v14  ;;  %v2715_v14 = vld [vmem:[#allocation11 + $0x60] sm:$0xff]  }
 0x1ae   :  { %1830 = vmatprep.subr.bf16.mxu0 %v2654_v63  ;;  %1873 = vmatprep.subr.bf16.mxu1 %v2702_v15  ;;  %v2716_v15 = vld [vmem:[#allocation11 + $0x20] sm:$0xff]  }
 0x1b1   :  { %1831 = vmatpush2.bf16.msra.mxu0 %v2652_v1  ;;  %1874 = vmatpush2.bf16.msra.mxu1 %v2700_v16  ;;  %v2717_v16 = vld [vmem:[#allocation11 + $0x58] sm:$0xff]  }
 0x1b2   :  { %1832 = vmatprep.subr.bf16.mxu0 %v2657_v3  ;;  %1875 = vmatprep.subr.bf16.mxu1 %v2705_v17  ;;  %v2718_v17 = vld [vmem:[#allocation11 + $0x18] sm:$0xff]  }
 0x1b5   :  { %1833 = vmatpush2.bf16.msra.mxu0 %v2655_v5  ;;  %1876 = vmatpush2.bf16.msra.mxu1 %v2703_v18  ;;  %v2719_v18 = vld [vmem:[#allocation11 + $0x50] sm:$0xff]  }
 0x1b6   :  { %1834 = vmatprep.subr.bf16.mxu0 %v2660_v7  ;;  %1877 = vmatprep.subr.bf16.mxu1 %v2708_v19  ;;  %v2710_v7 = vld [vmem:[#allocation11 + $0x38] sm:$0xff]   ;;  %v2720_v19 = vld [vmem:[#allocation11 + $0x10] sm:$0xff]  }
 0x1b9   :  { %1835 = vmatpush2.bf16.msra.mxu0 %v2658_v9  ;;  %1878 = vmatpush2.bf16.msra.mxu1 %v2706_v20  ;;  %v2712_v9 = vld [vmem:[#allocation11 + $0x30] sm:$0xff]   ;;  %v2721_v20 = vld [vmem:[#allocation11 + $0x48] sm:$0xff]  }
 0x1ba   :  { %2336 = vmatprep.subr.bf16.mxu0 %v2709_v6 }
 0x1fc   :  { %v1258_v24 = vpop.f32.mrf.mxu0  ;;  %v1301_v25 = vpop.f32.mrf.mxu1 }
 0x1fd   :  { %v1259_v12 = vadd.f32 %v1258_v24, %v567_v23 }
 0x1fe   :  { %v1260_v26 = vpop.f32.mrf.mxu0  ;;  %v1303_v27 = vpop.f32.mrf.mxu1 }
 0x1ff   :  { %v1261_v11 = vadd.f32 %v1260_v26, %v571_v22  ;;  %v1302_v35 = vadd.f32 %v1301_v25, %v1259_v12  ;;  %v1472_v26 = vld [vmem:[%s3019_s6] sm:$0x3] }
 0x200   :  { %v1262_v28 = vpop.f32.mrf.mxu0  ;;  %v1305_v29 = vpop.f32.mrf.mxu1  ;;  %v1477_v12 = vrot.slane %v1472_v26, %v2973_v40 }
 0x201   :  { %v1263_v30 = vadd.f32 %v1262_v28, %v567_v23  ;;  %v1304_v32 = vadd.f32 %v1303_v27, %v1261_v11  ;;  %v1396_v46 = vmax.f32 %v1302_v35, 0.0  ;;  %v2724_v23 = vld [vmem:[#allocation11] sm:$0xff]   ;;  %v1481_v11 = vrot.slane %v1472_v26, %v2969_v38 }
 0x202   :  { %v1264_v31 = vpop.f32.mrf.mxu0  ;;  %v1307_v36 = vpop.f32.mrf.mxu1 }
 0x203   :  { %v1306_v33 = vadd.f32 %v1305_v29, %v1263_v30  ;;  %v1265_v34 = vadd.f32 %v1264_v31, %v571_v22  ;;  %v1397_v44 = vmax.f32 %v1304_v32, 0.0  ;;  %v2723_v22 = vld [vmem:[#allocation11 + $0x40] sm:$0xff]  }
 0x205   :  { %v1308_v42 = vadd.f32 %v1307_v36, %v1265_v34  ;;  %v1400_v43 = vmax.f32 %v1306_v33, 0.0 }
 0x207   :  { %v1401_v45 = vmax.f32 %v1308_v42, 0.0  ;;  %v1404_v48 = vpack.c.bf16 %v1400_v43, %v1396_v46 }
 0x209   :  { %v1405_v47 = vpack.c.bf16 %v1401_v45, %v1397_v44 }
 0x20b   :  { %1836 = vmatprep.mubr.bf16.mxu0 %v1405_v47 }
 0x20c   :  { %1837 = vmatmul.mubr.bf16.vlgmr.msra.gmra.mxu0 %v1404_v48 }
 0x20d   :  { %2337 = vmatpush3.bf16.msra.mxu0 %v2710_v7 }
 0x20e   :  { %2338 = vmatprep.subr.bf16.mxu0 %v2711_v8 }
 0x211   :  { %2339 = vmatpush3.bf16.msra.mxu0 %v2712_v9 }
 0x212   :  { %2340 = vmatprep.subr.bf16.mxu0 %v2713_v10 }
 0x215   :  { %2341 = vmatpush3.bf16.msra.mxu0 %v2714_v13 }
 0x216   :  { %2342 = vmatprep.subr.bf16.mxu0 %v2715_v14 }
 0x219   :  { %2343 = vmatpush3.bf16.msra.mxu0 %v2716_v15 }
 0x21a   :  { %2344 = vmatprep.subr.bf16.mxu0 %v2717_v16 }
 0x21d   :  { %2345 = vmatpush3.bf16.msra.mxu0 %v2718_v17 }
 0x21e   :  { %2346 = vmatprep.subr.bf16.mxu0 %v2719_v18 }
 0x221   :  { %2347 = vmatpush3.bf16.msra.mxu0 %v2720_v19 }
 0x222   :  { %2348 = vmatprep.subr.bf16.mxu0 %v2721_v20 }
 0x225   :  { %2349 = vmatpush3.bf16.msra.mxu0 %v2722_v21 }
 0x226   :  { %2350 = vmatprep.subr.bf16.mxu0 %v2723_v22 }
 0x229   :  { %2351 = vmatpush3.bf16.msra.mxu0 %v2724_v23 }
 0x23c   :  { %v1344_v51 = vpop.f32.mrf.mxu0  ;;  %v1387_v52 = vpop.f32.mrf.mxu1 }
 0x23d   :  { %v1345_v56 = vadd.f32 %v1344_v51, %v575_v50  ;;  %v2319_v51 = vld [vmem:[%s3021_s8] ss:$0 sm:$0xff] }
 0x23e   :  { %v1346_v53 = vpop.f32.mrf.mxu0  ;;  %v1389_v54 = vpop.f32.mrf.mxu1 }
 0x23f   :  { %v1347_v55 = vadd.f32 %v1346_v53, %v579_v49  ;;  %v1388_v0 = vadd.f32 %v1387_v52, %v1345_v56 }
 0x240   :  { %v1348_v57 = vpop.f32.mrf.mxu0  ;;  %v1391_v58 = vpop.f32.mrf.mxu1 }
 0x241   :  { %v1349_v59 = vadd.f32 %v1348_v57, %v575_v50  ;;  %v1390_v61 = vadd.f32 %v1389_v54, %v1347_v55  ;;  %v1398_v41 = vmax.f32 %v1388_v0, 0.0 }
 0x242   :  { %v1350_v60 = vpop.f32.mrf.mxu0  ;;  %v1393_v1 = vpop.f32.mrf.mxu1 }
 0x243   :  { %v1392_v62 = vadd.f32 %v1391_v58, %v1349_v59  ;;  %v1351_v63 = vadd.f32 %v1350_v60, %v579_v49  ;;  %v1399_v3 = vmax.f32 %v1390_v61, 0.0 }
 0x245   :  { %v1394_v2 = vadd.f32 %v1393_v1, %v1351_v63  ;;  %v1402_v39 = vmax.f32 %v1392_v62, 0.0 }
 0x247   :  { %v1403_v37 = vmax.f32 %v1394_v2, 0.0  ;;  %v1406_v5 = vpack.c.bf16 %v1402_v39, %v1398_v41 }
 0x249   :  { %v1407_v4 = vpack.c.bf16 %v1403_v37, %v1399_v3 }
 0x24b   :  { %1879 = vmatprep.mubr.bf16.mxu1 %v1407_v4 }
 0x24c   :  { %1880 = vmatmul.mubr.bf16.vlgmr.msra.gmra.mxu1 %v1406_v5 }
 0x2cc   :  { %v1838_v24 = vpop.f32.mrf.mxu0 }
 0x2cd   :  { %v1839_v33 = vadd.f32 %v1838_v24, %v1477_v12 }
 0x2ce   :  { %v1840_v25 = vpop.f32.mrf.mxu0 }
 0x2cf   :  { %v1841_v31 = vadd.f32 %v1840_v25, %v1481_v11 }
 0x2d0   :  { %v1842_v27 = vpop.f32.mrf.mxu0 }
 0x2d1   :  { %v1843_v32 = vadd.f32 %v1842_v27, %v1477_v12 }
 0x2d2   :  { %v1844_v29 = vpop.f32.mrf.mxu0 }
 0x2d3   :  { %v1845_v35 = vadd.f32 %v1844_v29, %v1481_v11 }
 0x30c   :  { %v1881_v28 = vpop.f32.mrf.mxu1 }
 0x30d   :  { %v1882_v43 = vadd.f32 %v1881_v28, %v1839_v33 }
 0x30e   :  { %v1883_v30 = vpop.f32.mrf.mxu1 }
 0x30f   :  { %v1884_v36 = vadd.f32 %v1883_v30, %v1841_v31  ;;  %v1890_v49 = vmax.f32 %v1882_v43, 0.0 }
 0x310   :  { %v1885_v34 = vpop.f32.mrf.mxu1 }
 0x311   :  { %v1886_v42 = vadd.f32 %v1885_v34, %v1843_v32  ;;  %v1891_v47 = vmax.f32 %v1884_v36, 0.0 }
 0x312   :  { %v1887_v44 = vpop.f32.mrf.mxu1 }
 0x313   :  { %v1888_v45 = vadd.f32 %v1887_v44, %v1845_v35  ;;  %v1892_v46 = vmax.f32 %v1886_v42, 0.0 }
 0x315   :  { %v1893_v48 = vmax.f32 %v1888_v45, 0.0  ;;  %v1894_v50 = vpack.c.bf16 %v1892_v46, %v1890_v49 }
 0x317   :  { %v1895_v38 = vpack.c.bf16 %v1893_v48, %v1891_v47 }
 0x319   :  { %2063 = vmatprep.mubr.bf16.mxu0 %v1895_v38 }
 0x31a   :  { %2064 = vmatmul.mubr.bf16.vlgmr.msra.gmra.mxu0 %v1894_v50 }
 0x3da   :  { %v2352_v40 = vpop.f32.mrf.mxu0 }
 0x3dc   :  { %v2353_v52 = vpop.f32.mrf.mxu0 }
 0x3dd   :  { %v2354_v53 = vadd.f32 %v2353_v52, %v2352_v40 }
 0x3de   :  { %v2355_v54 = vpop.f32.mrf.mxu0 }
 0x3df   :  { %v2066_v55 = vadd.f32 %v2354_v53, %v2319_v51 }
 0x3e0   :  { %v2356_v56 = vpop.f32.mrf.mxu0 }
 0x3e1   :  { %2072 = vst [vmem:[#allocation13] sm:$0xff] %v2066_v55  ;;  %v2357_v57 = vadd.f32 %v2356_v56, %v2355_v54 }
 0x3e3   :  { %v2069_v58 = vadd.f32 %v2357_v57, %v2319_v51 }
 0x3e5   :  { %2073 = vst [vmem:[#allocation13 + $0x8] sm:$0xff] %v2069_v58 }
 0x3e6   :  { %2856 = shalt.err (!%p2853_p6)
}
 0x3e7   :  { %2085 = dma.vmem_to_hbm [thread:$0]  %s2080_s23, 256, %s3022_s9, [#allocation4], %s2884_s0, %s2884_s0, %s2885_s13  }
 0x3e8   :  { %2873 = dma.done.wait [#allocation4], 256  }
 0x3e9   :  { %2874 = vsyncadd [#allocation4], 4294967040 }
 0x3ea   :  { %2089 = vsyncpa [#allocation3], 1 }
 0x3eb   :  { %2090 = vsyncpa [#allocation6], 1 }
 0x3ec   :  { %2091 = vsyncpa [#allocation9], 1 }
 0x3ed   :  { %2092 = vsyncpa [#allocation12], 1 }
 0x3ee   :  { %2093 = vsyncpa [#allocation4], 1 }

</bundles_post_ra>
